<compile_context>
chip_gen: v5e
topology: v5e:2x2
jax: 0.10.0
libtpu: 0.0.40
codegen_flags: <defaults>
</compile_context>

<pallas_src>
import functools

import numpy as np
import jax
import jax.numpy as jnp
from jax import lax
from jax.experimental import pallas as pl
from jax.experimental.pallas import tpu as pltpu

NUM_ANCHORS = 2
BBOX_O = NUM_ANCHORS * 4      # 8
CLS_O = NUM_ANCHORS * 2       # 4
LDM_O = NUM_ANCHORS * 10      # 20
TOTAL_O = BBOX_O + CLS_O + LDM_O   # 32  (no zero padding)


def _make_heads_kernel(hw_sizes):
    """Kernel closure. One grid step == one batch element, all 3 levels fused.

    refs: x0,x1,x2: (1, C, HW_l)   NCHW-native per-level feature maps (bf16)
          w_ref:    (3, C, 32)     per-level fused head weights (bf16)
          b_ref:    (3, 1, 32)     per-level fused biases (f32)
          o_ref:    (1, total_HW, 32)
    """
    def kernel(x0_ref, x1_ref, x2_ref, w_ref, b_ref, o_ref):
        x_refs = (x0_ref, x1_ref, x2_ref)
        off = 0
        for li, hw in enumerate(hw_sizes):          # static unroll, 3 levels
            xb = x_refs[li][0]                       # (C, HW_l), native layout
            # Contract directly over C (no explicit (C,HW)->(HW,C) transpose);
            # MXU consumes the transposed LHS, accumulate in f32.
            y = lax.dot_general(
                xb, w_ref[li],
                dimension_numbers=(((0,), (0,)), ((), ())),
                preferred_element_type=jnp.float32)          # (HW_l, 32) f32
            y = y + b_ref[li]                                 # (1, 32) bcast
            o_ref[0, off:off + hw, :] = y.astype(o_ref.dtype)
            off += hw
    return kernel


def featherface_heads(features, w_stack, b_stack, phase="train",
                      compute_dtype=jnp.bfloat16, out_dtype=jnp.float32):
    """Fused detection heads for all 3 levels in a single pallas_call.

    features: list of 3 NCHW maps (B, C, H_l, W_l)  (SSH + shuffle outputs)
    w_stack:  (3, C, 32) fused [bbox|cls|ldm] 1x1-conv weights (C-major)
    b_stack:  (3, 1, 32) fused biases
    Returns (bbox (B, sumHW*A, 4), cls (B, sumHW*A, 2), ldm (B, sumHW*A, 10)).
    """
    assert len(features) == 3
    B, C = features[0].shape[:2]
    hw_sizes = tuple(int(f.shape[2]) * int(f.shape[3]) for f in features)
    for hw in hw_sizes:
        # Keeps every level's row offset sublane-aligned (perf, not correctness).
        assert hw % 8 == 0, f"level H*W={hw} must be a multiple of 8"
    total_hw = sum(hw_sizes)

    # Free reshape: NCHW is contiguous, (B, C, H, W) -> (B, C, H*W). Cast to
    # bf16 (no-op if upstream already produces bf16) to halve input HBM reads.
    xs = [f.reshape(B, C, hw).astype(compute_dtype)
          for f, hw in zip(features, hw_sizes)]
    w = w_stack.astype(compute_dtype)
    b = b_stack.astype(jnp.float32)

    in_specs = [pl.BlockSpec((1, C, hw), lambda bi: (bi, 0, 0)) for hw in hw_sizes]
    in_specs += [
        pl.BlockSpec((3, C, TOTAL_O), lambda bi: (0, 0, 0)),
        pl.BlockSpec((3, 1, TOTAL_O), lambda bi: (0, 0, 0)),
    ]

    # Explicit VMEM budget: double-buffered inputs (bf16) + output block
    # (conservatively assume the 32-wide output block is lane-padded in VMEM).
    in_bytes = sum(hw * C * np.dtype(compute_dtype).itemsize for hw in hw_sizes)
    out_bytes = total_hw * 128 * np.dtype(out_dtype).itemsize
    vmem_limit = int(min(2 * (in_bytes + out_bytes) + (4 << 20), 100 << 20))
    vmem_limit = max(vmem_limit, 16 << 20)

    out = pl.pallas_call(
        _make_heads_kernel(hw_sizes),
        out_shape=jax.ShapeDtypeStruct((B, total_hw, TOTAL_O), out_dtype),
        grid_spec=pltpu.PrefetchScalarGridSpec(
            num_scalar_prefetch=0,
            grid=(B,),
            in_specs=in_specs,
            out_specs=pl.BlockSpec((1, total_hw, TOTAL_O), lambda bi: (bi, 0, 0)),
        ),
        compiler_params=pltpu.CompilerParams(
            dimension_semantics=("parallel",),      # batch is independent
            vmem_limit_bytes=vmem_limit),
    )(*xs, w, b)

    # Matches torch: per-level conv1x1 -> permute(0,2,3,1) -> view(B,-1,k),
    # then cat(dim=1) across levels (levels already at the right row offsets).
    bbox = out[:, :, :BBOX_O].reshape(B, total_hw * NUM_ANCHORS, 4)
    cls = out[:, :, BBOX_O:BBOX_O + CLS_O].reshape(B, total_hw * NUM_ANCHORS, 2)
    ldm = out[:, :, BBOX_O + CLS_O:TOTAL_O].reshape(B, total_hw * NUM_ANCHORS, 10)
    if phase != "train":
        # TODO(synk): could be fused into the kernel's final store (EUP exp +
        # pl.reciprocal); kept as a tiny XLA op since it is not the hot path.
        cls = jax.nn.softmax(cls, axis=-1)
    return bbox, cls, ldm


def make_head_params(key_w, key_b, in_channels, num_levels=3,
                     w_dtype=jnp.bfloat16):
    """Xavier-normal-style synthetic weights for the 3 levels' three heads,
    fused per level into a (C, 32) matrix ([bbox 8 | cls 4 | ldm 20], each
    anchor-major within its head, matching torch conv channel order).
    (PyTorch init uses zero bias; a small random bias is used here so the
    correctness check also exercises the bias path.)"""
    wkeys = jax.random.split(key_w, num_levels)
    bkeys = jax.random.split(key_b, num_levels)

    def xavier(k, fan_out, fan_in):
        std = (2.0 / (fan_in + fan_out)) ** 0.5
        return std * jax.random.normal(k, (fan_out, fan_in), dtype=jnp.float32)

    w_list, b_list = [], []
    for wk, bk in zip(wkeys, bkeys):
        kb, kc, kl = jax.random.split(wk, 3)
        w_bbox = xavier(kb, BBOX_O, in_channels)     # (8,  C)
        w_cls = xavier(kc, CLS_O, in_channels)       # (4,  C)
        w_ldm = xavier(kl, LDM_O, in_channels)       # (20, C)
        w_fused = jnp.concatenate([w_bbox, w_cls, w_ldm], axis=0).T  # (C, 32)
        b_fused = 0.1 * jax.random.normal(bk, (1, TOTAL_O), dtype=jnp.float32)
        w_list.append(w_fused.astype(w_dtype))
        b_list.append(b_fused)
    return jnp.stack(w_list), jnp.stack(b_list)      # (3, C, 32), (3, 1, 32)


def _reference_heads(features, w_stack, b_stack, phase="train"):
    """Plain-JAX reference of the same computation (for correctness check)."""
    B, C = features[0].shape[:2]
    bboxes, clss, ldms = [], [], []
    for li, f in enumerate(features):
        _, _, H, W = f.shape
        x = jnp.transpose(f.astype(jnp.float32), (0, 2, 3, 1)).reshape(B * H * W, C)
        out = x @ w_stack[li].astype(jnp.float32) + b_stack[li].astype(jnp.float32)
        bboxes.append(out[:, :BBOX_O].reshape(B, H * W * NUM_ANCHORS, 4))
        clss.append(out[:, BBOX_O:BBOX_O + CLS_O].reshape(B, H * W * NUM_ANCHORS, 2))
        ldms.append(out[:, BBOX_O + CLS_O:].reshape(B, H * W * NUM_ANCHORS, 10))
    bbox = jnp.concatenate(bboxes, axis=1)
    cls = jnp.concatenate(clss, axis=1)
    ldm = jnp.concatenate(ldms, axis=1)
    if phase != "train":
        cls = jax.nn.softmax(cls, axis=-1)
    return bbox, cls, ldm


if __name__ == "__main__":
    key = jax.random.PRNGKey(0)
    B = 2
    OUT_CHANNELS = 32          # cfg['out_channel'] (small synthetic value)
    SPATIALS = [16, 8, 4]      # three detection levels (P3, P4, P5)

    k_feat, k_w, k_b = jax.random.split(key, 3)
    feat_keys = jax.random.split(k_feat, 3)

    # Synthetic per-level feature maps standing in for the SSH+shuffle outputs
    # (produced in bf16, as the bandwidth-optimal head path consumes them).
    features = [
        jax.random.normal(fk, (B, OUT_CHANNELS, s, s),
                          dtype=jnp.float32).astype(jnp.bfloat16)
        for fk, s in zip(feat_keys, SPATIALS)
    ]
    w_stack, b_stack = make_head_params(k_w, k_b, OUT_CHANNELS)

    run = jax.jit(functools.partial(featherface_heads, phase="train"))
    bbox, cls, ldm = run(features, w_stack, b_stack)
    jax.block_until_ready((bbox, cls, ldm))

    # Sanity: compare against plain-JAX reference (same bf16 inputs, f32 math).
    ref_bbox, ref_cls, ref_ldm = _reference_heads(features, w_stack, b_stack)
    total_anchors = sum(s * s for s in SPATIALS) * NUM_ANCHORS
    assert bbox.shape == ref_bbox.shape == (B, total_anchors, 4)
    assert cls.shape == (B, total_anchors, 2)
    assert ldm.shape == (B, total_anchors, 10)
    assert jnp.allclose(bbox, ref_bbox, atol=2e-3, rtol=2e-3)
    assert jnp.allclose(cls, ref_cls, atol=2e-3, rtol=2e-3)
    assert jnp.allclose(ldm, ref_ldm, atol=2e-3, rtol=2e-3)

    print("KERNEL_OK")
</pallas_src>

<mosaic_0001>
module attributes {stable_mosaic.version = 11 : i64} {
  func.func @kernel(%arg0: i32, %arg1: memref<1x32x256xbf16, #tpu.memory_space<vmem>>, %arg2: memref<1x32x64xbf16, #tpu.memory_space<vmem>>, %arg3: memref<1x32x16xbf16, #tpu.memory_space<vmem>>, %arg4: memref<3x32x32xbf16, #tpu.memory_space<vmem>>, %arg5: memref<3x1x32xf32, #tpu.memory_space<vmem>>, %arg6: memref<1x336x32xf32, #tpu.memory_space<vmem>>) attributes {dimension_semantics = [#tpu.dimension_semantics<parallel>], iteration_bounds = array<i64: 2>, scalar_prefetch = 0 : i64, scratch_operands = 0 : i64, tpu.core_type = #tpu.core_type<tc>, window_params = [{transform_indices = @transform_0, window_bounds = array<i64: 1, 32, 256>}, {transform_indices = @transform_1, window_bounds = array<i64: 1, 32, 64>}, {transform_indices = @transform_2, window_bounds = array<i64: 1, 32, 16>}, {pipeline_mode = #tpu.pipeline_mode<synchronous>, transform_indices = @transform_3, window_bounds = array<i64: 3, 32, 32>}, {pipeline_mode = #tpu.pipeline_mode<synchronous>, transform_indices = @transform_4, window_bounds = array<i64: 3, 1, 32>}, {transform_indices = @transform_5, window_bounds = array<i64: 1, 336, 32>}]} {
    %c0 = arith.constant 0 : index
    %c0_0 = arith.constant 0 : index
    %c0_1 = arith.constant 0 : index
    %0 = vector.load %arg1[%c0, %c0_0, %c0_1] : memref<1x32x256xbf16, #tpu.memory_space<vmem>>, vector<1x32x256xbf16>
    %1 = vector.shape_cast %0 : vector<1x32x256xbf16> to vector<32x256xbf16>
    %c0_2 = arith.constant 0 : index
    %c0_3 = arith.constant 0 : index
    %c0_4 = arith.constant 0 : index
    %2 = vector.load %arg4[%c0_2, %c0_3, %c0_4] : memref<3x32x32xbf16, #tpu.memory_space<vmem>>, vector<1x32x32xbf16>
    %3 = vector.shape_cast %2 : vector<1x32x32xbf16> to vector<32x32xbf16>
    %cst = arith.constant dense<0.000000e+00> : vector<256x32xf32>
    %4 = tpu.matmul %1, %3, %cst {dimension_numbers = #tpu.dot_dimension_numbers<[0], [0], [1], [1], [0, 1, 1, 1], [], []>} : vector<32x256xbf16>, vector<32x32xbf16>, vector<256x32xf32> -> vector<256x32xf32>
    %c0_5 = arith.constant 0 : index
    %c0_6 = arith.constant 0 : index
    %c0_7 = arith.constant 0 : index
    %5 = vector.load %arg5[%c0_5, %c0_6, %c0_7] : memref<3x1x32xf32, #tpu.memory_space<vmem>>, vector<1x1x32xf32>
    %6 = vector.shape_cast %5 : vector<1x1x32xf32> to vector<1x32xf32>
    %7 = vector.broadcast %6 : vector<1x32xf32> to vector<256x32xf32>
    %8 = arith.addf %4, %7 : vector<256x32xf32>
    %c0_8 = arith.constant 0 : index
    %c0_9 = arith.constant 0 : index
    %c0_10 = arith.constant 0 : index
    %9 = vector.load %arg6[%c0_8, %c0_9, %c0_10] : memref<1x336x32xf32, #tpu.memory_space<vmem>>, vector<1x256x32xf32>
    %10 = vector.shape_cast %9 : vector<1x256x32xf32> to vector<256x32xf32>
    %11 = vector.shape_cast %8 : vector<256x32xf32> to vector<1x256x32xf32>
    tpu.vector_store %arg6[%c0_8, %c0_9, %c0_10], %11 {strides = array<i32>} : memref<1x336x32xf32, #tpu.memory_space<vmem>>, vector<1x256x32xf32>,
    %c0_11 = arith.constant 0 : index
    %c0_12 = arith.constant 0 : index
    %c0_13 = arith.constant 0 : index
    %12 = vector.load %arg2[%c0_11, %c0_12, %c0_13] : memref<1x32x64xbf16, #tpu.memory_space<vmem>>, vector<1x32x64xbf16>
    %13 = vector.shape_cast %12 : vector<1x32x64xbf16> to vector<32x64xbf16>
    %c1 = arith.constant 1 : index
    %c0_14 = arith.constant 0 : index
    %c0_15 = arith.constant 0 : index
    %14 = vector.load %arg4[%c1, %c0_14, %c0_15] : memref<3x32x32xbf16, #tpu.memory_space<vmem>>, vector<1x32x32xbf16>
    %15 = vector.shape_cast %14 : vector<1x32x32xbf16> to vector<32x32xbf16>
    %cst_16 = arith.constant dense<0.000000e+00> : vector<64x32xf32>
    %16 = tpu.matmul %13, %15, %cst_16 {dimension_numbers = #tpu.dot_dimension_numbers<[0], [0], [1], [1], [0, 1, 1, 1], [], []>} : vector<32x64xbf16>, vector<32x32xbf16>, vector<64x32xf32> -> vector<64x32xf32>
    %c1_17 = arith.constant 1 : index
    %c0_18 = arith.constant 0 : index
    %c0_19 = arith.constant 0 : index
    %17 = vector.load %arg5[%c1_17, %c0_18, %c0_19] : memref<3x1x32xf32, #tpu.memory_space<vmem>>, vector<1x1x32xf32>
    %18 = vector.shape_cast %17 : vector<1x1x32xf32> to vector<1x32xf32>
    %19 = vector.broadcast %18 : vector<1x32xf32> to vector<64x32xf32>
    %20 = arith.addf %16, %19 : vector<64x32xf32>
    %c0_20 = arith.constant 0 : index
    %c256 = arith.constant 256 : index
    %c0_21 = arith.constant 0 : index
    %21 = vector.load %arg6[%c0_20, %c256, %c0_21] : memref<1x336x32xf32, #tpu.memory_space<vmem>>, vector<1x64x32xf32>
    %22 = vector.shape_cast %21 : vector<1x64x32xf32> to vector<64x32xf32>
    %23 = vector.shape_cast %20 : vector<64x32xf32> to vector<1x64x32xf32>
    tpu.vector_store %arg6[%c0_20, %c256, %c0_21], %23 {strides = array<i32>} : memref<1x336x32xf32, #tpu.memory_space<vmem>>, vector<1x64x32xf32>,
    %c0_22 = arith.constant 0 : index
    %c0_23 = arith.constant 0 : index
    %c0_24 = arith.constant 0 : index
    %24 = vector.load %arg3[%c0_22, %c0_23, %c0_24] : memref<1x32x16xbf16, #tpu.memory_space<vmem>>, vector<1x32x16xbf16>
    %25 = vector.shape_cast %24 : vector<1x32x16xbf16> to vector<32x16xbf16>
    %c2 = arith.constant 2 : index
    %c0_25 = arith.constant 0 : index
    %c0_26 = arith.constant 0 : index
    %26 = vector.load %arg4[%c2, %c0_25, %c0_26] : memref<3x32x32xbf16, #tpu.memory_space<vmem>>, vector<1x32x32xbf16>
    %27 = vector.shape_cast %26 : vector<1x32x32xbf16> to vector<32x32xbf16>
    %cst_27 = arith.constant dense<0.000000e+00> : vector<16x32xf32>
    %28 = tpu.matmul %25, %27, %cst_27 {dimension_numbers = #tpu.dot_dimension_numbers<[0], [0], [1], [1], [0, 1, 1, 1], [], []>} : vector<32x16xbf16>, vector<32x32xbf16>, vector<16x32xf32> -> vector<16x32xf32>
    %c2_28 = arith.constant 2 : index
    %c0_29 = arith.constant 0 : index
    %c0_30 = arith.constant 0 : index
    %29 = vector.load %arg5[%c2_28, %c0_29, %c0_30] : memref<3x1x32xf32, #tpu.memory_space<vmem>>, vector<1x1x32xf32>
    %30 = vector.shape_cast %29 : vector<1x1x32xf32> to vector<1x32xf32>
    %31 = vector.broadcast %30 : vector<1x32xf32> to vector<16x32xf32>
    %32 = arith.addf %28, %31 : vector<16x32xf32>
    %c0_31 = arith.constant 0 : index
    %c320 = arith.constant 320 : index
    %c0_32 = arith.constant 0 : index
    %33 = vector.load %arg6[%c0_31, %c320, %c0_32] : memref<1x336x32xf32, #tpu.memory_space<vmem>>, vector<1x16x32xf32>
    %34 = vector.shape_cast %33 : vector<1x16x32xf32> to vector<16x32xf32>
    %35 = vector.shape_cast %32 : vector<16x32xf32> to vector<1x16x32xf32>
    tpu.vector_store %arg6[%c0_31, %c320, %c0_32], %35 {strides = array<i32>} : memref<1x336x32xf32, #tpu.memory_space<vmem>>, vector<1x16x32xf32>,
    return
  }
  func.func @transform_0(%arg0: i32) -> (i32, i32, i32) {
    %c0_i32 = arith.constant 0 : i32
    %c0_i32_0 = arith.constant 0 : i32
    %c0_i32_1 = arith.constant 0 : i32
    return %arg0, %c0_i32, %c0_i32_0 : i32, i32, i32
  }
  func.func @transform_1(%arg0: i32) -> (i32, i32, i32) {
    %c0_i32 = arith.constant 0 : i32
    %c0_i32_0 = arith.constant 0 : i32
    %c0_i32_1 = arith.constant 0 : i32
    return %arg0, %c0_i32, %c0_i32_0 : i32, i32, i32
  }
  func.func @transform_2(%arg0: i32) -> (i32, i32, i32) {
    %c0_i32 = arith.constant 0 : i32
    %c0_i32_0 = arith.constant 0 : i32
    %c0_i32_1 = arith.constant 0 : i32
    return %arg0, %c0_i32, %c0_i32_0 : i32, i32, i32
  }
  func.func @transform_3(%arg0: i32) -> (i32, i32, i32) {
    %c0_i32 = arith.constant 0 : i32
    %c0_i32_0 = arith.constant 0 : i32
    %c0_i32_1 = arith.constant 0 : i32
    %c0_i32_2 = arith.constant 0 : i32
    return %c0_i32, %c0_i32_0, %c0_i32_1 : i32, i32, i32
  }
  func.func @transform_4(%arg0: i32) -> (i32, i32, i32) {
    %c0_i32 = arith.constant 0 : i32
    %c0_i32_0 = arith.constant 0 : i32
    %c0_i32_1 = arith.constant 0 : i32
    %c0_i32_2 = arith.constant 0 : i32
    return %c0_i32, %c0_i32_0, %c0_i32_1 : i32, i32, i32
  }
  func.func @transform_5(%arg0: i32) -> (i32, i32, i32) {
    %c0_i32 = arith.constant 0 : i32
    %c0_i32_0 = arith.constant 0 : i32
    %c0_i32_1 = arith.constant 0 : i32
    return %arg0, %c0_i32, %c0_i32_0 : i32, i32, i32
  }
}

</mosaic_0001>

<bundles_post_ra>
// kernel: featherface_heads.1
= control target key start
LH: loop header
LB: loop body
LE: loop exit
PB: predicated region body
PF: predicated region fallthrough
CT: control target
= control target key end

     0   :  { %s932_s18 = smov 0   ;;  %s1128_s0 = inlined_call_operand.vmem [shape: bf16[2,32,256], index: 0, kind: input, shape index: {}]   ;;  %s1129_s1 = inlined_call_operand.vmem [shape: bf16[2,32,64], index: 1, kind: input, shape index: {}]   ;;  %s1130_s2 = inlined_call_operand.vmem [shape: bf16[2,32,16], index: 2, kind: input, shape index: {}]   ;;  %s1131_s3 = inlined_call_operand.vmem [shape: bf16[3,32,32], index: 3, kind: input, shape index: {}]   ;;  %s1132_s4 = inlined_call_operand.vmem [shape: f32[3,1,32], index: 4, kind: input, shape index: {}]   ;;  %s1133_s5 = inlined_call_operand.vmem [shape: f32[2,336,32], index: 5, kind: output, shape index: {}]  }
   0x1 LB: > { %s759_s19 = sadd.s32 4294967295, %s900_s18   ;;  %p763_p0 = scmp.ge.s32.totalorder %s900_s18, 1  ;;  %s900_s18 = sphi %s932_s18, %s15_s18  }
   0x2   : > { %p207_p1 = scmp.lt.s32.totalorder %s900_s18, 3 }
   0x4   : > { %p208_p2 = pnand %p763_p0, %p207_p1 }
   0x5   : > { %p245_p3 = scmp.lt.s32.totalorder (!%p208_p2), %s759_s19, 1 }
   0x6   : > { %211 = sbr.rel (%p208_p2) target bundleno = 494 (0x1ee), region = 40 }
   0xb   : > { %v868_v0 = vld [vmem:[%s1131_s3 + $0x8] sm:$0xff]  ;;  %s1135_s19 = smov (!%p245_p3, %s759_s19), 1  ;;  %v867_v1 = vld [vmem:[%s1131_s3] sm:$0xff]  ;;  %vm334_vm0 = vcmask 261120   ;;  %v872_v28 = vld [vmem:[%s1131_s3 + $0x18] sm:$0xff] }
   0xc   : > { %389 = vmatpush.bf16.msra.mxu0 %v868_v0  ;;  %878 = vmatpush.bf16.msra.mxu3 %v868_v0  ;;  %s860_s24 = sshll.u32 %s1135_s19, 5  ;;  %s861_s28 = sshll.u32 %s1135_s19, 4  ;;  %v876_v27 = vld [vmem:[%s1131_s3 + $0x28] sm:$0xff]  ;;  %v871_v30 = vld [vmem:[%s1131_s3 + $0x10] sm:$0xff]  ;;  %v875_v36 = vld [vmem:[%s1131_s3 + $0x20] sm:$0xff] }
   0xd   : > { %877 = vmatpush.bf16.msra.mxu2 %v868_v0  ;;  %s249_s27 = scalar_lea.vmem %s1128_s0, %s860_s24  ;;  %s254_s6 = scalar_lea.vmem %s1129_s1, %s861_s28  ;;  %576 = vmatpush.bf16.msra.mxu1 %v872_v28  ;;  %v992_v41 = vld [vmem:[%s1132_s4] ss:$0 sm:$0xff] }
   0xe   : > { %v863_v2 = vld [vmem:[%s249_s27 + $0x4] sm:$0xf]  ;;  %v773_v3 = vld [vmem:[%s249_s27] sm:$0xf]  ;;  %v775_v4 = vld [vmem:[%s249_s27 + $0x8] sm:$0xf0]  ;;  %s259_s9 = scalar_lea.vmem %s1130_s2, %s861_s28 }
   0xf   : > { %v864_v5 = vld [vmem:[%s249_s27 + $0x4] sm:$0xf0]  ;;  %v778_v6 = vor.u32 %v863_v2, %v775_v4  ;;  %v869_v8 = vld [vmem:[%s254_s6] sm:$0xff]  ;;  %v865_v10 = vld [vmem:[%s249_s27 + $0x14] sm:$0xf]  ;;  %s881_s20 = smul.u32 336, %s1135_s19 }
  0x10   : > { %390 = vmatpush.bf16.msra.mxu0 %v867_v1  ;;  %880 = vmatpush.bf16.msra.mxu3 %v867_v1  ;;  %v774_v7 = vor.u32 %v864_v5, %v773_v3  ;;  %v873_v9 = vld [vmem:[%s259_s9] sm:$0xff]  ;;  %v781_v11 = vld [vmem:[%s249_s27 + $0x10] sm:$0xf]  ;;  %v783_v12 = vld [vmem:[%s249_s27 + $0x18] sm:$0xf0] }
  0x11   : > { %879 = vmatpush.bf16.msra.mxu2 %v867_v1  ;;  %530 = vxpose.xlu1.c.b16.start [1/2] (short) (narrow) %v869_v8, 64  ;;  %v866_v13 = vld [vmem:[%s249_s27 + $0x14] sm:$0xf0]  ;;  %v786_v15 = vor.u32 %v865_v10, %v783_v12  ;;  %v870_v16 = vld [vmem:[%s254_s6 + $0x8] sm:$0xff]  ;;  %s997_s25 = scalar_lea.vmem %s1133_s5, %s881_s20 }
  0x12   : > { %298 = vxpose.binary.xlu0.c.b16.start [1/4] (short) %v778_v6, %v774_v7, 128  ;;  %v782_v14 = vor.u32 %v866_v13, %v781_v11  ;;  %v874_v17 = vld [vmem:[%s259_s9 + $0x8] sm:$0xff]  ;;  %v892_v13 = vld [vmem:[%s1132_s4 + $0x1] ss:$0 sm:$0xff] }
  0x13   : > { %633 = vxpose.xlu2.c.b16.start [1/2] (short) (narrow) %v873_v9, 16  ;;  %577 = vmatpush.bf16.msra.mxu1 %v871_v30 }
  0x15   : > { %670 = vmatpush.bf16.msrb.mxu2 %v876_v27 }
  0x19   : > { %671 = vmatpush.bf16.msrb.mxu2 %v875_v36 }
  0x21   : > { %531 = vxpose.xlu1.c.b16.end [2/2] (short) (narrow) %v870_v16, 64 }
  0x22   : > { %299 = vxpose.binary.xlu0.c.b16.end [2/4] (short) %v786_v15, %v782_v14, 128 }
  0x23   : > { %634 = vxpose.xlu2.c.b16.end [2/2] (short) (narrow) %v874_v17, 16 }
  0xb4   : > { %v641_v52 = vpop.trf.xlu2 }
  0xbd   : > { %v538_v31 = vpop.trf.xlu1 }
  0xbe   : > { %v306_v18 = vpop.trf.xlu0  ;;  %832 = vmatmul.msk.bf16.vlgmr.msra.gmra.mxu1 %vm334_vm0, %v538_v31 }
  0xbf   : > { %795 = vmatmul.msk.bf16.vlgmr.msra.gmra.mxu0 %vm334_vm0, %v306_v18 }
  0xc6   : > { %v307_v19 = vpop.trf.xlu0 }
  0xcd   : > { %v539_v34 = vpop.trf.xlu1 }
  0xce   : > { %v308_v20 = vpop.trf.xlu0  ;;  %833 = vmatmul.msk.bf16.gmra.mxu1 %vm334_vm0, %v539_v34 }
  0xcf   : > { %796 = vmatmul.msk.bf16.gmra.mxu0 %vm334_vm0, %v308_v20 }
  0xd6   : > { %v309_v21 = vpop.trf.xlu0 }
  0xdd   : > { %v540_v38 = vpop.trf.xlu1 }
  0xde   : > { %v310_v22 = vpop.trf.xlu0  ;;  %834 = vmatmul.msk.bf16.gmra.mxu1 %vm334_vm0, %v540_v38 }
  0xdf   : > { %797 = vmatmul.msk.bf16.gmra.mxu0 %vm334_vm0, %v310_v22 }
  0xe6   : > { %v311_v23 = vpop.trf.xlu0 }
  0xe7   : > { %805 = vmatmul.msk.bf16.vlgmr.msra.gmra.mxu3 %vm334_vm0, %v311_v23 }
  0xed   : > { %v541_v42 = vpop.trf.xlu1 }
  0xee   : > { %v312_v24 = vpop.trf.xlu0  ;;  %835 = vmatmul.msk.bf16.gmra.mxu1 %vm334_vm0, %v541_v42 }
  0xef   : > { %798 = vmatmul.msk.bf16.gmra.mxu0 %vm334_vm0, %v312_v24 }
  0xf6   : > { %v313_v25 = vpop.trf.xlu0 }
  0xf7   : > { %806 = vmatmul.msk.bf16.gmra.mxu3 %vm334_vm0, %v313_v25 }
  0xfe   : > { %v314_v26 = vpop.trf.xlu0 }
  0xff   : > { %799 = vmatmul.msk.bf16.gmra.mxu0 %vm334_vm0, %v314_v26 }
 0x106   : > { %v315_v29 = vpop.trf.xlu0 }
 0x107   : > { %807 = vmatmul.msk.bf16.gmra.mxu3 %vm334_vm0, %v315_v29 }
 0x10e   : > { %v316_v32 = vpop.trf.xlu0 }
 0x10f   : > { %800 = vmatmul.msk.bf16.gmra.mxu0 %vm334_vm0, %v316_v32 }
 0x116   : > { %v317_v33 = vpop.trf.xlu0 }
 0x117   : > { %808 = vmatmul.msk.bf16.gmra.mxu3 %vm334_vm0, %v317_v33 }
 0x11e   : > { %v318_v35 = vpop.trf.xlu0 }
 0x11f   : > { %801 = vmatmul.msk.bf16.vlgmr.msra.gmra.mxu2 %vm334_vm0, %v318_v35 }
 0x126   : > { %v319_v37 = vpop.trf.xlu0 }
 0x127   : > { %809 = vmatmul.msk.bf16.gmra.mxu3 %vm334_vm0, %v319_v37 }
 0x12e   : > { %v320_v39 = vpop.trf.xlu0 }
 0x12f   : > { %802 = vmatmul.msk.bf16.gmra.mxu2 %vm334_vm0, %v320_v39 }
 0x136   : > { %v321_v40 = vpop.trf.xlu0 }
 0x137   : > { %810 = vmatmul.msk.bf16.gmra.mxu3 %vm334_vm0, %v321_v40 }
 0x13b   : > { %v579_v10 = vpop.f32.mrf.mxu1 }
 0x13c   : > { %v392_v43 = vpop.f32.mrf.mxu0  ;;  %v580_v14 = vadd.f32 %v892_v13, %v579_v10 }
 0x13d   : > { %v393_v44 = vadd.f32 %v992_v41, %v392_v43 }
 0x13e   : > { %599 = vst.msk [vmem:[%s997_s25 + $0x100] sm:$0xff] %vm334_vm0, %v580_v14 }
 0x13f   : > { %472 = vst.msk [vmem:[%s997_s25] sm:$0xff] %vm334_vm0, %v393_v44  ;;  %803 = vmatmul.msk.bf16.gmra.mxu2 %vm334_vm0, %v307_v19 }
 0x143   : > { %v581_v17 = vpop.f32.mrf.mxu1 }
 0x144   : > { %v394_v45 = vpop.f32.mrf.mxu0  ;;  %v582_v19 = vadd.f32 %v892_v13, %v581_v17 }
 0x145   : > { %v395_v46 = vadd.f32 %v992_v41, %v394_v45 }
 0x146   : > { %600 = vst.msk [vmem:[%s997_s25 + $0x108] sm:$0xff] %vm334_vm0, %v582_v19 }
 0x147   : > { %473 = vst.msk [vmem:[%s997_s25 + $0x8] sm:$0xff] %vm334_vm0, %v395_v46 }
 0x14b   : > { %v584_v23 = vpop.f32.mrf.mxu1 }
 0x14c   : > { %v397_v47 = vpop.f32.mrf.mxu0  ;;  %v585_v24 = vadd.f32 %v892_v13, %v584_v23 }
 0x14d   : > { %v398_v48 = vadd.f32 %v992_v41, %v397_v47 }
 0x14e   : > { %601 = vst.msk [vmem:[%s997_s25 + $0x110] sm:$0xff] %vm334_vm0, %v585_v24 }
 0x14f   : > { %474 = vst.msk [vmem:[%s997_s25 + $0x10] sm:$0xff] %vm334_vm0, %v398_v48  ;;  %804 = vmatmul.msk.bf16.gmra.mxu2 %vm334_vm0, %v309_v21 }
 0x153   : > { %v586_v29 = vpop.f32.mrf.mxu1 }
 0x154   : > { %v399_v49 = vpop.f32.mrf.mxu0  ;;  %v587_v30 = vadd.f32 %v892_v13, %v586_v29 }
 0x155   : > { %v400_v50 = vadd.f32 %v992_v41, %v399_v49 }
 0x156   : > { %602 = vst.msk [vmem:[%s997_s25 + $0x118] sm:$0xff] %vm334_vm0, %v587_v30 }
 0x157   : > { %475 = vst.msk [vmem:[%s997_s25 + $0x18] sm:$0xff] %vm334_vm0, %v400_v50 }
 0x15b   : > { %v589_v35 = vpop.f32.mrf.mxu1 }
 0x15c   : > { %v402_v51 = vpop.f32.mrf.mxu0  ;;  %v590_v36 = vadd.f32 %v892_v13, %v589_v35 }
 0x15d   : > { %v403_v53 = vadd.f32 %v992_v41, %v402_v51 }
 0x15e   : > { %603 = vst.msk [vmem:[%s997_s25 + $0x120] sm:$0xff] %vm334_vm0, %v590_v36 }
 0x15f   : > { %476 = vst.msk [vmem:[%s997_s25 + $0x20] sm:$0xff] %vm334_vm0, %v403_v53  ;;  %857 = vmatmul.msk.bf16.vlgmr.msrb.gmra.mxu2 %vm334_vm0, %v641_v52 }
 0x163   : > { %v591_v42 = vpop.f32.mrf.mxu1 }
 0x164   : > { %v404_v54 = vpop.f32.mrf.mxu0  ;;  %v592_v43 = vadd.f32 %v892_v13, %v591_v42 }
 0x165   : > { %v405_v55 = vadd.f32 %v992_v41, %v404_v54 }
 0x166   : > { %604 = vst.msk [vmem:[%s997_s25 + $0x128] sm:$0xff] %vm334_vm0, %v592_v43 }
 0x167   : > { %477 = vst.msk [vmem:[%s997_s25 + $0x28] sm:$0xff] %vm334_vm0, %v405_v55 }
 0x16a   : > { %v442_v56 = vpop.f32.mrf.mxu3 }
 0x16b   : > { %v443_v57 = vadd.f32 %v992_v41, %v442_v56  ;;  %v594_v47 = vpop.f32.mrf.mxu1 }
 0x16c   : > { %v407_v58 = vpop.f32.mrf.mxu0  ;;  %v595_v49 = vadd.f32 %v892_v13, %v594_v47 }
 0x16d   : > { %492 = vst.msk [vmem:[%s997_s25 + $0xa0] sm:$0xff] %vm334_vm0, %v443_v57  ;;  %v408_v59 = vadd.f32 %v992_v41, %v407_v58 }
 0x16e   : > { %605 = vst.msk [vmem:[%s997_s25 + $0x130] sm:$0xff] %vm334_vm0, %v595_v49 }
 0x16f   : > { %478 = vst.msk [vmem:[%s997_s25 + $0x30] sm:$0xff] %vm334_vm0, %v408_v59 }
 0x172   : > { %v444_v60 = vpop.f32.mrf.mxu3 }
 0x173   : > { %v445_v61 = vadd.f32 %v992_v41, %v444_v60  ;;  %v596_v53 = vpop.f32.mrf.mxu1 }
 0x174   : > { %v409_v62 = vpop.f32.mrf.mxu0  ;;  %v597_v55 = vadd.f32 %v892_v13, %v596_v53 }
 0x175   : > { %493 = vst.msk [vmem:[%s997_s25 + $0xa8] sm:$0xff] %vm334_vm0, %v445_v61  ;;  %v410_v63 = vadd.f32 %v992_v41, %v409_v62  ;;  %v893_v62 = vld [vmem:[%s1132_s4 + $0x2] ss:$0 sm:$0xff] }
 0x176   : > { %606 = vst.msk [vmem:[%s997_s25 + $0x138] sm:$0xff] %vm334_vm0, %v597_v55 }
 0x177   : > { %479 = vst.msk [vmem:[%s997_s25 + $0x38] sm:$0xff] %vm334_vm0, %v410_v63 }
 0x17a   : > { %v447_v0 = vpop.f32.mrf.mxu3 }
 0x17b   : > { %v448_v1 = vadd.f32 %v992_v41, %v447_v0 }
 0x17c   : > { %v412_v2 = vpop.f32.mrf.mxu0 }
 0x17d   : > { %494 = vst.msk [vmem:[%s997_s25 + $0xb0] sm:$0xff] %vm334_vm0, %v448_v1  ;;  %v413_v3 = vadd.f32 %v992_v41, %v412_v2 }
 0x17f   : > { %480 = vst.msk [vmem:[%s997_s25 + $0x40] sm:$0xff] %vm334_vm0, %v413_v3 }
 0x182   : > { %v449_v4 = vpop.f32.mrf.mxu3 }
 0x183   : > { %v450_v5 = vadd.f32 %v992_v41, %v449_v4 }
 0x184   : > { %v414_v6 = vpop.f32.mrf.mxu0 }
 0x185   : > { %495 = vst.msk [vmem:[%s997_s25 + $0xb8] sm:$0xff] %vm334_vm0, %v450_v5  ;;  %v415_v7 = vadd.f32 %v992_v41, %v414_v6 }
 0x187   : > { %481 = vst.msk [vmem:[%s997_s25 + $0x48] sm:$0xff] %vm334_vm0, %v415_v7 }
 0x18a   : > { %v452_v8 = vpop.f32.mrf.mxu3 }
 0x18b   : > { %v453_v9 = vadd.f32 %v992_v41, %v452_v8 }
 0x18c   : > { %v417_v11 = vpop.f32.mrf.mxu0 }
 0x18d   : > { %496 = vst.msk [vmem:[%s997_s25 + $0xc0] sm:$0xff] %vm334_vm0, %v453_v9  ;;  %v418_v12 = vadd.f32 %v992_v41, %v417_v11 }
 0x18f   : > { %482 = vst.msk [vmem:[%s997_s25 + $0x50] sm:$0xff] %vm334_vm0, %v418_v12 }
 0x192   : > { %v454_v15 = vpop.f32.mrf.mxu3 }
 0x193   : > { %v455_v16 = vadd.f32 %v992_v41, %v454_v15 }
 0x194   : > { %v419_v18 = vpop.f32.mrf.mxu0 }
 0x195   : > { %497 = vst.msk [vmem:[%s997_s25 + $0xc8] sm:$0xff] %vm334_vm0, %v455_v16  ;;  %v420_v20 = vadd.f32 %v992_v41, %v419_v18 }
 0x197   : > { %483 = vst.msk [vmem:[%s997_s25 + $0x58] sm:$0xff] %vm334_vm0, %v420_v20 }
 0x19a   : > { %v457_v21 = vpop.f32.mrf.mxu3 }
 0x19b   : > { %v458_v22 = vadd.f32 %v992_v41, %v457_v21 }
 0x19d   : > { %498 = vst.msk [vmem:[%s997_s25 + $0xd0] sm:$0xff] %vm334_vm0, %v458_v22 }
 0x1a2   : > { %v422_v25 = vpop.f32.mrf.mxu2  ;;  %v459_v26 = vpop.f32.mrf.mxu3 }
 0x1a3   : > { %v423_v27 = vadd.f32 %v992_v41, %v422_v25  ;;  %v460_v28 = vadd.f32 %v992_v41, %v459_v26 }
 0x1a5   : > { %484 = vst.msk [vmem:[%s997_s25 + $0x60] sm:$0xff] %vm334_vm0, %v423_v27 }
 0x1a6   : > { %499 = vst.msk [vmem:[%s997_s25 + $0xd8] sm:$0xff] %vm334_vm0, %v460_v28 }
 0x1aa   : > { %v424_v31 = vpop.f32.mrf.mxu2  ;;  %v462_v32 = vpop.f32.mrf.mxu3 }
 0x1ab   : > { %v425_v33 = vadd.f32 %v992_v41, %v424_v31  ;;  %v463_v34 = vadd.f32 %v992_v41, %v462_v32 }
 0x1ad   : > { %485 = vst.msk [vmem:[%s997_s25 + $0x68] sm:$0xff] %vm334_vm0, %v425_v33 }
 0x1ae   : > { %500 = vst.msk [vmem:[%s997_s25 + $0xe0] sm:$0xff] %vm334_vm0, %v463_v34 }
 0x1b2   : > { %v427_v37 = vpop.f32.mrf.mxu2  ;;  %v464_v38 = vpop.f32.mrf.mxu3 }
 0x1b3   : > { %v428_v39 = vadd.f32 %v992_v41, %v427_v37  ;;  %v465_v40 = vadd.f32 %v992_v41, %v464_v38 }
 0x1b5   : > { %486 = vst.msk [vmem:[%s997_s25 + $0x70] sm:$0xff] %vm334_vm0, %v428_v39 }
 0x1b6   : > { %501 = vst.msk [vmem:[%s997_s25 + $0xe8] sm:$0xff] %vm334_vm0, %v465_v40 }
 0x1ba   : > { %v429_v44 = vpop.f32.mrf.mxu2  ;;  %v467_v46 = vpop.f32.mrf.mxu3 }
 0x1bb   : > { %v430_v45 = vadd.f32 %v992_v41, %v429_v44  ;;  %v468_v48 = vadd.f32 %v992_v41, %v467_v46 }
 0x1bd   : > { %487 = vst.msk [vmem:[%s997_s25 + $0x78] sm:$0xff] %vm334_vm0, %v430_v45 }
 0x1be   : > { %502 = vst.msk [vmem:[%s997_s25 + $0xf0] sm:$0xff] %vm334_vm0, %v468_v48 }
 0x1c2   : > { %v432_v50 = vpop.f32.mrf.mxu2  ;;  %v469_v52 = vpop.f32.mrf.mxu3 }
 0x1c3   : > { %v433_v51 = vadd.f32 %v992_v41, %v432_v50  ;;  %v470_v54 = vadd.f32 %v992_v41, %v469_v52 }
 0x1c5   : > { %488 = vst.msk [vmem:[%s997_s25 + $0x80] sm:$0xff] %vm334_vm0, %v433_v51 }
 0x1c6   : > { %503 = vst.msk [vmem:[%s997_s25 + $0xf8] sm:$0xff] %vm334_vm0, %v470_v54 }
 0x1ca   : > { %v434_v56 = vpop.f32.mrf.mxu2 }
 0x1cb   : > { %v435_v57 = vadd.f32 %v992_v41, %v434_v56 }
 0x1cd   : > { %489 = vst.msk [vmem:[%s997_s25 + $0x88] sm:$0xff] %vm334_vm0, %v435_v57 }
 0x1d2   : > { %v437_v58 = vpop.f32.mrf.mxu2 }
 0x1d3   : > { %v438_v59 = vadd.f32 %v992_v41, %v437_v58 }
 0x1d5   : > { %490 = vst.msk [vmem:[%s997_s25 + $0x90] sm:$0xff] %vm334_vm0, %v438_v59 }
 0x1da   : > { %v439_v60 = vpop.f32.mrf.mxu2 }
 0x1db   : > { %v440_v61 = vadd.f32 %v992_v41, %v439_v60 }
 0x1dd   : > { %491 = vst.msk [vmem:[%s997_s25 + $0x98] sm:$0xff] %vm334_vm0, %v440_v61 }
 0x1e2   : > { %v673_v63 = vpop.f32.mrf.mxu2 }
 0x1e3   : > { %v674_v0 = vadd.f32 %v893_v62, %v673_v63 }
 0x1e5   : > { %678 = vst.msk [vmem:[%s997_s25 + $0x140] sm:$0xff] %vm334_vm0, %v674_v0 }
 0x1ea   : > { %v675_v1 = vpop.f32.mrf.mxu2 }
 0x1eb   : > { %v676_v2 = vadd.f32 %v893_v62, %v675_v1 }
 0x1ed   : > { %679 = vst.msk [vmem:[%s997_s25 + $0x148] sm:$0xff] %vm334_vm0, %v676_v2 }
 0x1ee PF: > { %s15_s18 = sadd.s32 1, %s900_s18  }
 0x1ef   : > { %p12_p4 = scmp.ge.s32.totalorder %s15_s18, 4  }
 0x1f1   :  { %14 = sbr.rel (!%p12_p4) target bundleno = 1 (0x1), region = 80 }

</bundles_post_ra>
